<compile_context>
chip_gen: v7x
topology: tpu7x:2x2x1
jax: 0.10.0
libtpu: 0.0.40
codegen_flags: <defaults>
</compile_context>

<pallas_src>
import functools

import jax
import jax.numpy as jnp
from jax.experimental import pallas as pl
from jax.experimental.pallas import tpu as pltpu

_LANES = 128


def _round_up(x, m):
    return ((x + m - 1) // m) * m


def _round_down(x, m):
    return (x // m) * m


# ----------------------------------------------------------------------------
# Small/medium vocab: stream the full (N, V) matrix, fused one-hot select.
# ----------------------------------------------------------------------------
def _nll_stream_kernel(x_ref, t_ref, o_ref, iota_ref):
    # x_ref:    (TR, TV)    log-probs, native dtype; tail blocks may contain garbage
    # t_ref:    (TR, 1)     int32 targets (resident across the vocab axis)
    # o_ref:    (1, 1, TV)  f32 per-row-tile partial sums (resident across the vocab axis)
    # iota_ref: (TR, TV)    int32 cached local lane indices
    j = pl.program_id(1)
    tile_v = x_ref.shape[-1]

    @pl.when(j == 0)
    def _():
        # Once per row tile (megacore-safe: every core owning a row tile sees j == 0).
        iota_ref[...] = jax.lax.broadcasted_iota(jnp.int32, iota_ref.shape, 1)
        o_ref[...] = jnp.zeros_like(o_ref)

    # Per-row (lane-width-1) scalar work only: local column of the target inside this vocab
    # tile, with ignore_index folded in (-1 never matches a lane index).
    t = t_ref[...]                                              # (TR, 1)
    t_loc = jnp.where(t == 0, -1, t - j * tile_v)               # (TR, 1)

    # Full-block work: one compare + one select + one add per element.  The SELECT (never a
    # multiply) keeps NaN/Inf garbage from unpadded tail blocks / padded lanes inert.
    mask = iota_ref[...] == t_loc                               # (TR, TV)
    sel = jnp.where(mask, x_ref[...], jnp.zeros((), x_ref.dtype))
    o_ref[...] += jnp.sum(
        sel.astype(jnp.float32), axis=0, keepdims=True
    ).reshape(o_ref.shape)


def _nll_sum_streaming(x, t, *, tile_rows, tile_v):
    N, V = x.shape

    # Lane-dense vocab tiles, 8-aligned row tiles; shrink for tiny inputs.
    tile_v = max(_LANES, _round_down(tile_v, _LANES))
    tile_v = min(tile_v, _round_up(V, _LANES))
    tile_rows = max(8, _round_down(tile_rows, 8))
    tile_rows = min(tile_rows, _round_up(N, 8))
    if N >= 16:
        # Guarantee >= 2 row tiles so the "parallel" axis can feed both v7x TensorCores.
        tile_rows = min(tile_rows, max(8, _round_down(N // 2, 8)))

    n_r = pl.cdiv(N, tile_rows)
    n_v = pl.cdiv(V, tile_v)
    Np = n_r * tile_rows

    # Only the tiny target vector is padded; padded rows get target 0 -> ignored, which
    # also neutralizes the garbage rows of x's (unpadded) tail blocks.
    if Np != N:
        t = jnp.pad(t, (0, Np - N))
    t = t.reshape(Np, 1)

    partials = pl.pallas_call(
        _nll_stream_kernel,
        out_shape=jax.ShapeDtypeStruct((n_r, 1, tile_v), jnp.float32),
        grid_spec=pltpu.PrefetchScalarGridSpec(
            num_scalar_prefetch=0,
            grid=(n_r, n_v),  # rows outer (parallel), vocab inner (reduction, "arbitrary")
            in_specs=[
                pl.BlockSpec((tile_rows, tile_v), lambda i, j: (i, j)),
                # Independent of j: the target block stays resident across vocab tiles.
                pl.BlockSpec((tile_rows, 1), lambda i, j: (i, 0)),
            ],
            # Independent of j as well: o_ref is the accumulator, resident across vocab tiles.
            out_specs=pl.BlockSpec((1, 1, tile_v), lambda i, j: (i, 0, 0)),
            scratch_shapes=[pltpu.VMEM((tile_rows, tile_v), jnp.int32)],
        ),
        compiler_params=pltpu.CompilerParams(
            dimension_semantics=("parallel", "arbitrary"),
            vmem_limit_bytes=48 * 1024 * 1024,
        ),
    )(x, t)

    # Picked log-probs were summed un-negated; apply the sign once on the final scalar.
    return -jnp.sum(partials)


# ----------------------------------------------------------------------------
# Large vocab: scalar-prefetch gather of one 128-lane slab per row (manual DMA).
# ----------------------------------------------------------------------------
def _nll_gather_kernel(t_smem, t_ref, x_hbm, o_ref, buf, sem, *, n_rows, slabs_per_row):
    # t_smem: (Np,)             int32 targets in SMEM (scalar prefetch, DMA addressing)
    # t_ref:  (TR, 1)           int32 targets in VMEM (vectorized mask)
    # x_hbm:  (N*V/128, 128)    log-probs viewed as 128-lane slabs, left in HBM
    # o_ref:  (1, 1, 128)       f32 per-row-tile partial sums
    # buf:    (TR, 128)         gathered slabs
    # sem:    DMA semaphore shared by all slab copies of this row tile
    i = pl.program_id(0)
    tile_rows = buf.shape[0]
    base = i * tile_rows

    @pl.loop(0, tile_rows)
    def _(r):
        # Clamp tail rows into range; their target is 0 in t_ref so the slab is never used.
        row = jnp.minimum(base + r, n_rows - 1)
        tgt = t_smem[row]
        slab = row * slabs_per_row + (tgt // _LANES)
        pltpu.make_async_copy(x_hbm.at[slab], buf.at[r], sem).start()

    @pl.loop(0, tile_rows)
    def _(r):
        pltpu.make_async_copy(x_hbm.at[0], buf.at[r], sem).wait()

    t = t_ref[...]                                              # (TR, 1)
    lane = jax.lax.broadcasted_iota(jnp.int32, buf.shape, 1)    # (TR, 128)
    t_loc = jnp.where(t == 0, -1, t & (_LANES - 1))             # target's lane within its slab
    sel = jnp.where(lane == t_loc, buf[...], jnp.zeros((), buf.dtype))
    o_ref[...] = jnp.sum(
        sel.astype(jnp.float32), axis=0, keepdims=True
    ).reshape(o_ref.shape)


def _nll_sum_gather(x, t, *, tile_rows):
    N, V = x.shape
    slabs_per_row = V // _LANES
    x_slabs = x.reshape(N * slabs_per_row, _LANES)  # pure row-major view, no HBM copy

    tile_rows = max(8, _round_down(tile_rows, 8))
    tile_rows = min(tile_rows, _round_up(N, 8))
    if N >= 16:
        tile_rows = min(tile_rows, max(8, _round_down(N // 2, 8)))

    n_r = pl.cdiv(N, tile_rows)
    Np = n_r * tile_rows
    if Np != N:
        t = jnp.pad(t, (0, Np - N))
    t2d = t.reshape(Np, 1)

    kernel = functools.partial(
        _nll_gather_kernel, n_rows=N, slabs_per_row=slabs_per_row
    )

    partials = pl.pallas_call(
        kernel,
        out_shape=jax.ShapeDtypeStruct((n_r, 1, _LANES), jnp.float32),
        grid_spec=pltpu.PrefetchScalarGridSpec(
            num_scalar_prefetch=1,
            grid=(n_r,),
            in_specs=[
                pl.BlockSpec((tile_rows, 1), lambda i, tp: (i, 0)),
                pl.BlockSpec(memory_space=pl.ANY),  # x stays in HBM; gathered manually
            ],
            out_specs=pl.BlockSpec((1, 1, _LANES), lambda i, tp: (i, 0, 0)),
            scratch_shapes=[
                pltpu.VMEM((tile_rows, _LANES), x.dtype),
                pltpu.SemaphoreType.DMA,
            ],
        ),
        compiler_params=pltpu.CompilerParams(
            dimension_semantics=("parallel",),
        ),
    )(t, t2d, x_slabs)

    return -jnp.sum(partials)


# ----------------------------------------------------------------------------
# Public wrapper matching SequenceCriterion.forward
# ----------------------------------------------------------------------------
def sequence_criterion(inputs, targets, *, tile_rows=512, tile_v=4096,
                       gather_tile_rows=256, gather_vocab_threshold=8192):
    """NLLLoss(ignore_index=0, size_average=False) for (B,T,V) log-probs and (B,T) targets."""
    B, T, V = inputs.shape
    N = B * T
    x = inputs.reshape(N, V)                  # native dtype: no f32 up-cast pass in HBM
    t = targets.reshape(N).astype(jnp.int32)

    if V >= gather_vocab_threshold and V % _LANES == 0:
        return _nll_sum_gather(x, t, tile_rows=gather_tile_rows)
    return _nll_sum_streaming(x, t, tile_rows=tile_rows, tile_v=tile_v)


def _reference(inputs, targets):
    B, T, V = inputs.shape
    x = inputs.reshape(B * T, V).astype(jnp.float32)
    t = targets.reshape(B * T)
    picked = jnp.take_along_axis(x, t[:, None], axis=1)[:, 0]
    return -jnp.sum(jnp.where(t != 0, picked, 0.0))


if __name__ == "__main__":
    # Check 1: small shape matching the module (batch=2, seq=8, vocab=32), f32 streaming path.
    k1, k2 = jax.random.split(jax.random.PRNGKey(0))
    B, T, V = 2, 8, 32
    inputs = jax.nn.log_softmax(jax.random.normal(k1, (B, T, V), jnp.float32), axis=-1)
    targets = jax.random.randint(k2, (B, T), 0, V)     # includes some 0s (ignored)
    loss = sequence_criterion(inputs, targets)
    jax.block_until_ready(loss)
    ref = _reference(inputs, targets)
    assert jnp.allclose(loss, ref, rtol=1e-5, atol=1e-5), (loss, ref)

    # Check 2: bf16 streaming (native-dtype stream), multi-tile grid with row & vocab tail
    # blocks and NO padding of x.
    k3, k4 = jax.random.split(jax.random.PRNGKey(1))
    B2, T2, V2 = 4, 97, 1000
    inputs2 = jax.nn.log_softmax(jax.random.normal(k3, (B2, T2, V2), jnp.float32), axis=-1)
    inputs2 = inputs2.astype(jnp.bfloat16)
    targets2 = jax.random.randint(k4, (B2, T2), 0, V2)
    loss2 = sequence_criterion(inputs2, targets2, tile_rows=128, tile_v=256)
    jax.block_until_ready(loss2)
    ref2 = _reference(inputs2, targets2)
    assert jnp.allclose(loss2, ref2, rtol=1e-3, atol=0.5), (loss2, ref2)

    # Check 3: large-vocab gather path (scalar-prefetch + per-row 128-lane slab DMA).
    k5, k6 = jax.random.split(jax.random.PRNGKey(2))
    B3, T3, V3 = 2, 16, 4096
    inputs3 = jax.nn.log_softmax(jax.random.normal(k5, (B3, T3, V3), jnp.float32), axis=-1)
    targets3 = jax.random.randint(k6, (B3, T3), 0, V3)
    loss3 = sequence_criterion(inputs3, targets3, gather_vocab_threshold=2048)
    jax.block_until_ready(loss3)
    ref3 = _reference(inputs3, targets3)
    assert jnp.allclose(loss3, ref3, rtol=1e-5, atol=1e-4), (loss3, ref3)

    print("KERNEL_OK")
</pallas_src>

<mosaic_0001>
module attributes {stable_mosaic.version = 11 : i64} {
  func.func @_nll_stream_kernel(%arg0: i32, %arg1: i32, %arg2: memref<8x128xf32, #tpu.memory_space<vmem>>, %arg3: memref<8x1xi32, #tpu.memory_space<vmem>>, %arg4: memref<1x1x128xf32, #tpu.memory_space<vmem>>, %arg5: memref<8x128xi32, #tpu.memory_space<vmem>>) attributes {dimension_semantics = [#tpu.dimension_semantics<parallel>, #tpu.dimension_semantics<arbitrary>], iteration_bounds = array<i64: 2, 1>, scalar_prefetch = 0 : i64, scratch_operands = 1 : i64, tpu.core_type = #tpu.core_type<tc>, window_params = [{transform_indices = @transform_0, window_bounds = array<i64: 8, 128>}, {transform_indices = @transform_1, window_bounds = array<i64: 8, 1>}, {transform_indices = @transform_2, window_bounds = array<i64: 1, 1, 128>}]} {
    %c0_i32 = arith.constant 0 : i32
    %0 = arith.cmpi eq, %arg1, %c0_i32 : i32
    %1 = arith.extui %0 : i1 to i32
    %c0_i32_0 = arith.constant 0 : i32
    %2 = arith.cmpi ne, %1, %c0_i32_0 : i32
    scf.if %2 {
      %23 = tpu.iota {dimensions = array<i32: 1>} : vector<8x128xi32>
      %c0_14 = arith.constant 0 : index
      %c0_15 = arith.constant 0 : index
      %24 = vector.load %arg5[%c0_14, %c0_15] : memref<8x128xi32, #tpu.memory_space<vmem>>, vector<8x128xi32>
      tpu.vector_store %arg5[%c0_14, %c0_15], %23 {strides = array<i32>} : memref<8x128xi32, #tpu.memory_space<vmem>>, vector<8x128xi32>,
      %cst_16 = arith.constant 0.000000e+00 : f32
      %25 = vector.broadcast %cst_16 : f32 to vector<1x1x128xf32>
      %c0_17 = arith.constant 0 : index
      %c0_18 = arith.constant 0 : index
      %c0_19 = arith.constant 0 : index
      %26 = vector.load %arg4[%c0_17, %c0_18, %c0_19] : memref<1x1x128xf32, #tpu.memory_space<vmem>>, vector<1x1x128xf32>
      tpu.vector_store %arg4[%c0_17, %c0_18, %c0_19], %25 {strides = array<i32>} : memref<1x1x128xf32, #tpu.memory_space<vmem>>, vector<1x1x128xf32>,
    } else {
    }
    %c0 = arith.constant 0 : index
    %c0_1 = arith.constant 0 : index
    %3 = vector.load %arg3[%c0, %c0_1] : memref<8x1xi32, #tpu.memory_space<vmem>>, vector<8x1xi32>
    %c0_i32_2 = arith.constant 0 : i32
    %4 = vector.broadcast %c0_i32_2 : i32 to vector<8x1xi32>
    %5 = arith.cmpi eq, %3, %4 : vector<8x1xi32>
    %c128_i32 = arith.constant 128 : i32
    %6 = arith.muli %arg1, %c128_i32 : i32
    %7 = vector.broadcast %6 : i32 to vector<8x1xi32>
    %8 = arith.subi %3, %7 : vector<8x1xi32>
    %c-1_i32 = arith.constant -1 : i32
    %9 = vector.broadcast %c-1_i32 : i32 to vector<8x1xi32>
    %10 = arith.select %5, %9, %8 : vector<8x1xi1>, vector<8x1xi32>
    %c0_3 = arith.constant 0 : index
    %c0_4 = arith.constant 0 : index
    %11 = vector.load %arg5[%c0_3, %c0_4] : memref<8x128xi32, #tpu.memory_space<vmem>>, vector<8x128xi32>
    %12 = vector.broadcast %10 : vector<8x1xi32> to vector<8x128xi32>
    %13 = arith.cmpi eq, %11, %12 : vector<8x128xi32>
    %c0_5 = arith.constant 0 : index
    %c0_6 = arith.constant 0 : index
    %14 = vector.load %arg2[%c0_5, %c0_6] : memref<8x128xf32, #tpu.memory_space<vmem>>, vector<8x128xf32>
    %cst = arith.constant 0.000000e+00 : f32
    %15 = vector.broadcast %cst : f32 to vector<8x128xf32>
    %16 = arith.select %13, %14, %15 : vector<8x128xi1>, vector<8x128xf32>
    %c0_7 = arith.constant 0 : index
    %c0_8 = arith.constant 0 : index
    %c0_9 = arith.constant 0 : index
    %17 = vector.load %arg4[%c0_7, %c0_8, %c0_9] : memref<1x1x128xf32, #tpu.memory_space<vmem>>, vector<1x1x128xf32>
    %cst_10 = arith.constant dense<0.000000e+00> : vector<128xf32>
    %18 = vector.multi_reduction <add>, %16, %cst_10 [0] : vector<8x128xf32> to vector<128xf32>
    %19 = vector.shape_cast %18 : vector<128xf32> to vector<1x128xf32>
    %20 = vector.shape_cast %19 : vector<1x128xf32> to vector<1x1x128xf32>
    %21 = arith.addf %17, %20 : vector<1x1x128xf32>
    %c0_11 = arith.constant 0 : index
    %c0_12 = arith.constant 0 : index
    %c0_13 = arith.constant 0 : index
    %22 = vector.load %arg4[%c0_11, %c0_12, %c0_13] : memref<1x1x128xf32, #tpu.memory_space<vmem>>, vector<1x1x128xf32>
    tpu.vector_store %arg4[%c0_11, %c0_12, %c0_13], %21 {strides = array<i32>} : memref<1x1x128xf32, #tpu.memory_space<vmem>>, vector<1x1x128xf32>,
    return
  }
  func.func @transform_0(%arg0: i32, %arg1: i32) -> (i32, i32) {
    %c0_i32 = arith.constant 0 : i32
    return %arg0, %arg1 : i32, i32
  }
  func.func @transform_1(%arg0: i32, %arg1: i32) -> (i32, i32) {
    %c0_i32 = arith.constant 0 : i32
    %c0_i32_0 = arith.constant 0 : i32
    return %arg0, %c0_i32 : i32, i32
  }
  func.func @transform_2(%arg0: i32, %arg1: i32) -> (i32, i32, i32) {
    %c0_i32 = arith.constant 0 : i32
    %c0_i32_0 = arith.constant 0 : i32
    %c0_i32_1 = arith.constant 0 : i32
    return %arg0, %c0_i32, %c0_i32_0 : i32, i32, i32
  }
}

</mosaic_0001>

<bundles_post_ra>
// kernel: tpu_custom_call.1
= control target key start
LH: loop header
LB: loop body
LE: loop exit
PB: predicated region body
PF: predicated region fallthrough
CT: control target
= control target key end

     0   :  { %7 = vsyncpa [#allocation4], 0  ;;  %s580_s0 = inlined_call_operand.vmem [shape: f32[16,32], index: 0, kind: input, shape index: {}]   ;;  %s581_s1 = inlined_call_operand.vmem [shape: s32[16,1], index: 1, kind: input, shape index: {}]   ;;  %s582_s2 = inlined_call_operand.hbm [shape: f32[2,1,128], index: 2, kind: output, shape index: {}]  }
   0x1   :  { %9 = vsyncpa [#allocation4 + $0x1], 0  ;;  %s465_s9 = smov 0   ;;  %s467_s10 = smov 0  }
   0x2   :  { %s469_s11 = smov 0   ;;  %s471_s12 = smov 0  }
   0x3   :  { %s473_s13 = smov 0   ;;  %s475_s14 = smov 0  }
   0x4 LB: > { %s299_s15 = sadd.s32 4294967295, %s445_s14   ;;  %s300_s16 = sadd.s32 4294967294, %s445_s14   ;;  %s445_s14 = sphi %s475_s14, %s15_s14   ;;  %s441_s13 = sphi %s473_s13, %s589_s13   ;;  %s437_s12 = sphi %s471_s12, %s588_s12   ;;  %s433_s11 = sphi %s469_s11, %s587_s11   ;;  %s429_s10 = sphi %s467_s10, %s586_s10   ;;  %s425_s9 = sphi %s465_s9, %s585_s9  }
   0x5   : > { %s27_s17 = sadd.s32 1, %s441_s13  ;;  %s88_s18 = sadd.s32 1, %s433_s11 }
   0x6   : > { %p29_p0 = scmp.ge.s32.totalorder %s27_s17, 2  ;;  %p98_p1 = scmp.ne.s32.totalorder %s433_s11, %s429_s10 }
   0x7   : > { %p99_p2 = scmp.eq.s32.totalorder %s299_s15, 1  ;;  %p104_p3 = scmp.ne.s32.totalorder %s429_s10, %s425_s9 }
   0x8   : > { %s591_s17 = smov (%p29_p0, %s27_s17), 0  ;;  %p105_p5 = scmp.eq.s32.totalorder %s300_s16, 1 }
   0x9   : > { %p505_p4 = por %p99_p2, %p98_p1  ;;  %s85_s20 = ssub.s32 %s441_s13, %s591_s17 }
   0xa   : > { %p303_p6 = scmp.ge.s32.totalorder %s445_s14, 1  ;;  %p86_p7 = scmp.eq.s32.totalorder %s85_s20, 0 }
   0xb   : > { %p512_p8 = por %p105_p5, %p104_p3  ;;  %p140_p9 = scmp.lt.s32.totalorder %s445_s14, 3 }
   0xc   : > { %s518_s22 = scalar_select %p86_p7, %s433_s11, %s88_s18  }
   0xd   : > { %p141_p10 = pnand %p303_p6, %p140_p9 }
   0xe   : > { %p167_p11 = scmp.lt.s32.totalorder (!%p141_p10), %s437_s12, 1  ;;  %v447_v0 = vmov (!%p141_p10), 0   ;;  %s165_s28 = sand.u32 (!%p141_p10), 1, %s429_s10   ;;  %v448_v3 = vmov (!%p141_p10), 0.0   ;;  %v182_v4 = vlaneseq (!%p141_p10) }
   0xf   : > { %144 = sbr.rel (%p141_p10) target bundleno = 187 (0xbb), region = 28  ;;  %366 = vset.pattern.permute.xlu0 (!%p141_p10), %v447_v0  ;;  %s166_s29 = scalar_lea.vmem (!%p141_p10), [#allocation3], %s165_s28 }
  0x10   : > { %185 = vst [vmem:[%s166_s29] sm:$0x1] (!%p141_p10), %v448_v3  ;;  %v183_v5 = vand.u32 (!%p141_p10), 127, %v182_v4  ;;  %s306_s5 = sshll.u32 (!%p141_p10), %s437_s12, 4  ;;  %s221_s6 = sshll.u32 (!%p141_p10), %s166_s29, 4  ;;  %s535_s6 = int_to_ptr.vmem [resolvable:$true] %s221_s6 }
  0x11   : > { %s533_s15 = scalar_lea.hbm (!%p141_p10), %s582_s2, %s306_s5  ;;  %s209_s16 = scalar_lea.sflag (!%p141_p10), [#allocation4], %s165_s28 }
  0x12   : > { %s367_s18 = scalar_lea.vmem (!%p141_p10), %s535_s6, 16 }
  0x13   : > { %p368_p12 = scmp.ne.s32.totalorder (!%p141_p10), %s535_s6, %s367_s18 }
  0x15   : > { %p369_p13 = pnand (!%p141_p10), %p368_p12, %p505_p4 }
  0x16   : > { %s168_s23 = scalar_select %p167_p11, %s437_s12, 1 }
  0x17   : > { %v199_v14 = vld [vmem:[%s166_s29] sm:$0x1]  ;;  %p370_p0 = pneg %p369_p13  ;;  %s449_s12 = smov [#allocation3]  }
  0x18   : > { %s304_s24 = sshll.u32 %s168_s23, 3  ;;  %s371_s20 = sshll.u32 %s449_s12, 4  ;;  %s372_s20 = int_to_ptr.vmem [resolvable:$false] %s371_s20 }
  0x19   : > { %s177_s27 = scalar_lea.vmem %s581_s1, %s304_s24  ;;  %s173_s4 = scalar_lea.vmem %s580_s0, %s304_s24 }
  0x1a   : > { %v186_v1 = vld [vmem:[%s177_s27] sm:$0xff]  ;;  %s373_s23 = scalar_lea.vmem %s372_s20, 32  ;;  %p374_p1 = scmp.lt.s32.totalorder %s535_s6, %s372_s20 }
  0x1b   : > { %vm187_vm0 = vcmp.eq.s32.totalorder %v186_v1, 0  ;;  %v197_v6 = vld [vmem:[%s173_s4] sm:$0xff]  ;;  %p375_p2 = scmp.lt.s32.totalorder %s373_s23, %s367_s18 }
  0x1c   : > { %v191_v2 = vsel %vm187_vm0, 4294967295, %v186_v1 }
  0x1d   : > { %194 = vperm.xlu0 %366, %v191_v2   ;;  %p376_p3 = por %p375_p2, %p374_p1 }
  0x1f   : > { %p377_p5 = pnand %p376_p3, %p370_p0 }
  0x9c   : > { %v195_v7 = vpop.permute.xlu0 %194 }
  0x9d   : > { %vm196_vm1 = vcmp.eq.s32.totalorder %v183_v5, %v195_v7 }
  0x9e   : > { %v198_v8 = vsel %vm196_vm1, %v197_v6, 0.0 }
  0x9f   : > { %v200_v9 = vrot.slane %v198_v8, 4 }
  0xa1   : > { %v201_v10 = vadd.f32 %v200_v9, %v198_v8 }
  0xa3   : > { %v202_v11 = vrot.slane %v201_v10, 2 }
  0xa5   : > { %v203_v12 = vadd.f32 %v202_v11, %v201_v10 }
  0xa7   : > { %v204_v13 = vrot.slane %v203_v12, 1 }
  0xa9   : > { %v205_v15 = vadd.f32 %v204_v13, %v203_v12 }
  0xab   : > { %v206_v16 = vadd.f32 %v205_v15, %v199_v14 }
  0xad   : > { %207 = vst [vmem:[%s166_s29] sm:$0x1] %v206_v16 }
  0xae   : > { %380 = shalt.err (!%p377_p5)
}
  0xaf   : > { %s381_s24 = scalar_lea.hbm %s533_s15, 16  ;;  %s385_s27 = scalar_lea.hbm %s582_s2, 32 }
  0xb0   : > { %p382_p6 = scmp.ne.s32.totalorder %s533_s15, %s381_s24  ;;  %p386_p10 = scmp.lt.u32.totalorder %s533_s15, %s582_s2 }
  0xb1   : > { %p387_p11 = scmp.lt.u32.totalorder %s385_s27, %s381_s24  ;;  %p389_p13 = scmp.lt.u32.totalorder %s381_s24, %s533_s15 }
  0xb2   : > { %p383_p7 = pnand %p382_p6, %p505_p4 }
  0xb3   : > { %p388_p12 = por %p387_p11, %p386_p10 }
  0xb4   : > { %p384_p9 = pneg %p383_p7 }
  0xb5   : > { %p390_p0 = por %p389_p13, %p388_p12 }
  0xb7   : > { %p391_p1 = pnand %p390_p0, %p384_p9 }
  0xb9   : > { %394 = shalt.err (!%p391_p1)
}
  0xba   : > { %309 = dma.vmem_to_hbm [thread:$0]  (%p505_p4), %s535_s6, 16, %s533_s15, %s209_s16  }
  0xbb PF: > { %p315_p2 = scmp.ge.s32.totalorder %s445_s14, 2  ;;  %s233_s30 = sand.u32 1, %s425_s9  }
  0xbc   : > { %s234_s3 = scalar_lea.sflag [#allocation4], %s233_s30 }
  0xbd   : > { %p312_p3 = pnand %p315_p2, %p512_p8 }
  0xbf   : > { %420 = dma.done.wait (!%p312_p3), %s234_s3, 16  }
  0xc0   : > { %422 = vsyncadd (!%p312_p3), %s234_s3, 4294967280  ;;  %s15_s14 = sadd.s32 1, %s445_s14   ;;  %s585_s9 = smov %s429_s10 }
  0xc1   : > { %p12_p5 = scmp.ge.s32.totalorder %s15_s14, 4   ;;  %s586_s10 = smov %s433_s11 }
  0xc2   : > { %s587_s11 = smov %s518_s22  ;;  %s588_s12 = smov %s441_s13 }
  0xc3   : > { %s589_s13 = smov %s591_s17  ;;  %14 = sbr.rel (!%p12_p5) target bundleno = 4 (0x4), region = 70 }
  0xca   :  { %238 = vsyncpa [#allocation4], 1 }
  0xcb   :  { %240 = vsyncpa [#allocation4 + $0x1], 1 }

</bundles_post_ra>
